<compile_context>
chip_gen: v5e
topology: v5e:2x2
jax: 0.10.0
libtpu: 0.0.40
codegen_flags: <defaults>
</compile_context>

<pallas_src>
import functools

import jax
import jax.numpy as jnp
from jax import lax
from jax.experimental import pallas as pl
from jax.experimental.pallas import tpu as pltpu


# ----------------------------------------------------------------------------
# Small-config path: single grid step, all layers unrolled inside the kernel.
# ----------------------------------------------------------------------------
def _mlp_single_step_kernel(x_ref, w_ref, b_ref, o_ref, *, layers):
    # x_ref : (B, D)    f32   -- model input
    # w_ref : (L, D, D) bf16  -- full weight stack, already (in, out)
    # b_ref : (L, 1, D) f32   -- full bias stack
    # o_ref : (B, D)    f32   -- output
    a0 = x_ref[...].astype(jnp.bfloat16)          # bf16 running activation

    def body(l, a):
        # bf16 x bf16 -> f32 accumulate on the MXU.
        y = jnp.dot(a, w_ref[l], preferred_element_type=jnp.float32)
        y = jnp.maximum(y + b_ref[l], 0.0)        # f32 bias + ReLU epilogue
        return y.astype(jnp.bfloat16)

    a = lax.fori_loop(0, layers, body, a0, unroll=True)
    o_ref[...] = a.astype(o_ref.dtype)


# ----------------------------------------------------------------------------
# Large-config fallback: one grid step per layer, output ref is the accumulator.
# ----------------------------------------------------------------------------
def _mlp_layer_step_kernel(x_ref, w_ref, b_ref, o_ref):
    # x_ref : (B, D) f32   -- model input (same block every step, fetched once)
    # w_ref : (D, D) bf16  -- current layer's weight tile
    # b_ref : (1, D) f32   -- current layer's bias
    # o_ref : (B, D) f32   -- output ref doubles as the resident activation
    l = pl.program_id(0)

    @pl.when(l == 0)
    def _init():
        o_ref[...] = x_ref[...]

    a = o_ref[...].astype(jnp.bfloat16)
    y = jnp.dot(a, w_ref[...], preferred_element_type=jnp.float32)
    o_ref[...] = jnp.maximum(y + b_ref[...], 0.0).astype(o_ref.dtype)


def dummy_model_forward(x, w_stack, b_stack, *, small_vmem_budget=4 << 20):
    """Fused forward.

    x        : (B, D)    float32
    w_stack  : (L, D, D) bfloat16, pre-transposed to (in, out)
    b_stack  : (L, 1, D) float32
    returns  : (B, D)    float32
    """
    B, D = x.shape
    L = w_stack.shape[0]
    weight_bytes = L * D * D * w_stack.dtype.itemsize

    if weight_bytes <= small_vmem_budget:
        # Whole weight stack fits comfortably in VMEM -> one grid step,
        # layers unrolled in-kernel (no per-layer grid overhead).
        kernel = functools.partial(_mlp_single_step_kernel, layers=L)
        return pl.pallas_call(
            kernel,
            out_shape=jax.ShapeDtypeStruct((B, D), x.dtype),
            grid=(1,),
            in_specs=[
                pl.BlockSpec((B, D), lambda i: (0, 0)),
                pl.BlockSpec((L, D, D), lambda i: (0, 0, 0)),
                pl.BlockSpec((L, 1, D), lambda i: (0, 0, 0)),
            ],
            out_specs=pl.BlockSpec((B, D), lambda i: (0, 0)),
            compiler_params=pltpu.CompilerParams(
                dimension_semantics=("arbitrary",)),
        )(x, w_stack, b_stack)

    # Fallback: stream one (D, D) weight tile per layer; output is resident
    # across the (sequentially dependent) layer axis.
    # TODO(synk): for very large D on v7x (64 MiB VMEM), add an N-dim grid axis
    # with 256-wide weight tiles instead of the full (D, D) block.
    needed = (2 * D * D * w_stack.dtype.itemsize          # double-buffered weight
              + 2 * D * b_stack.dtype.itemsize            # double-buffered bias
              + 4 * B * D * x.dtype.itemsize              # input + output blocks
              + (4 << 20))                                # headroom
    vmem_limit = max(32 << 20, min(needed, 64 << 20)) if needed > (32 << 20) else None

    return pl.pallas_call(
        _mlp_layer_step_kernel,
        out_shape=jax.ShapeDtypeStruct((B, D), x.dtype),
        grid_spec=pltpu.PrefetchScalarGridSpec(
            num_scalar_prefetch=0,
            grid=(L,),
            in_specs=[
                pl.BlockSpec((B, D), lambda l: (0, 0)),           # input, fetched once
                pl.BlockSpec((None, D, D), lambda l: (l, 0, 0)),  # per-layer weight tile
                pl.BlockSpec((None, 1, D), lambda l: (l, 0, 0)),  # per-layer bias
            ],
            out_specs=pl.BlockSpec((B, D), lambda l: (0, 0)),     # resident accumulator
        ),
        compiler_params=pltpu.CompilerParams(
            dimension_semantics=("arbitrary",),   # layers are sequentially dependent
            vmem_limit_bytes=vmem_limit),
    )(x, w_stack, b_stack)


# ----------------------------------------------------------------------------
# Parameter construction / packing (one-time, outside the forward path).
# ----------------------------------------------------------------------------
def init_params(key, layers, dim, dtype=jnp.float32):
    """Deterministic params mimicking nn.Linear: W (dim_out, dim_in), b (dim,)."""
    params = []
    for i in range(layers):
        kw, kb, key = jax.random.split(jax.random.fold_in(key, i), 3)
        bound = 1.0 / jnp.sqrt(dim)
        w = jax.random.uniform(kw, (dim, dim), dtype, -bound, bound)  # PyTorch (out, in)
        b = jax.random.uniform(kb, (dim,), dtype, -bound, bound)
        params.append((w, b))
    return params


def pack_params(params):
    """Transpose weights to (in, out), cast to bf16, stack along a layer axis."""
    w_stack = jnp.stack([w.T.astype(jnp.bfloat16) for w, _ in params])   # (L, D, D)
    b_stack = jnp.stack([b.reshape(1, -1) for _, b in params])           # (L, 1, D) f32
    return w_stack, b_stack


if __name__ == "__main__":
    layers, dim, batch = 3, 128, 8
    key = jax.random.PRNGKey(0)
    kx, kp = jax.random.split(key)
    x = jax.random.normal(kx, (batch, dim), jnp.float32)
    params = init_params(kp, layers, dim)
    w_stack, b_stack = pack_params(params)

    # Fast single-step path (weights fit easily in VMEM at this size).
    out = jax.block_until_ready(jax.jit(dummy_model_forward)(x, w_stack, b_stack))

    # Also exercise the per-layer streaming fallback path.
    fallback_fwd = jax.jit(functools.partial(dummy_model_forward, small_vmem_budget=0))
    out_fb = jax.block_until_ready(fallback_fwd(x, w_stack, b_stack))

    # Sanity check vs. plain-JAX float32 reference (loose tol: bf16 weights +
    # bf16 inter-layer activations).
    ref = x
    for w, b in params:
        ref = jnp.maximum(ref @ w.T + b, 0.0)

    assert out.shape == (batch, dim)
    assert jnp.allclose(out, ref, atol=5e-2, rtol=5e-2), (
        float(jnp.max(jnp.abs(out - ref))))
    assert jnp.allclose(out_fb, ref, atol=5e-2, rtol=5e-2), (
        float(jnp.max(jnp.abs(out_fb - ref))))

    print("KERNEL_OK")
</pallas_src>

<mosaic_0001>
module attributes {stable_mosaic.version = 11 : i64} {
  func.func @_mlp_single_step_kernel(%arg0: i32, %arg1: memref<8x128xf32, #tpu.memory_space<vmem>>, %arg2: memref<3x128x128xbf16, #tpu.memory_space<vmem>>, %arg3: memref<3x1x128xf32, #tpu.memory_space<vmem>>, %arg4: memref<8x128xf32, #tpu.memory_space<vmem>>) attributes {dimension_semantics = [#tpu.dimension_semantics<arbitrary>], iteration_bounds = array<i64: 1>, scalar_prefetch = 0 : i64, scratch_operands = 0 : i64, tpu.core_type = #tpu.core_type<tc>, window_params = [{pipeline_mode = #tpu.pipeline_mode<synchronous>, transform_indices = @transform_0, window_bounds = array<i64: 8, 128>}, {pipeline_mode = #tpu.pipeline_mode<synchronous>, transform_indices = @transform_1, window_bounds = array<i64: 3, 128, 128>}, {pipeline_mode = #tpu.pipeline_mode<synchronous>, transform_indices = @transform_2, window_bounds = array<i64: 3, 1, 128>}, {pipeline_mode = #tpu.pipeline_mode<synchronous>, transform_indices = @transform_3, window_bounds = array<i64: 8, 128>}]} {
    %c0 = arith.constant 0 : index
    %c0_0 = arith.constant 0 : index
    %0 = vector.load %arg1[%c0, %c0_0] : memref<8x128xf32, #tpu.memory_space<vmem>>, vector<8x128xf32>
    %1 = arith.truncf %0 : vector<8x128xf32> to vector<8x128xbf16>
    %c0_i32 = arith.constant 0 : i32
    %2 = arith.index_cast %c0_i32 : i32 to index
    %c0_1 = arith.constant 0 : index
    %c0_2 = arith.constant 0 : index
    %3 = vector.load %arg2[%2, %c0_1, %c0_2] : memref<3x128x128xbf16, #tpu.memory_space<vmem>>, vector<1x128x128xbf16>
    %4 = vector.shape_cast %3 : vector<1x128x128xbf16> to vector<128x128xbf16>
    %cst = arith.constant dense<0.000000e+00> : vector<8x128xf32>
    %5 = tpu.matmul %1, %4, %cst {dimension_numbers = #tpu.dot_dimension_numbers<[1], [0], [0], [1], [0, 0, 1, 1], [], []>} : vector<8x128xbf16>, vector<128x128xbf16>, vector<8x128xf32> -> vector<8x128xf32>
    %6 = arith.index_cast %c0_i32 : i32 to index
    %c0_3 = arith.constant 0 : index
    %c0_4 = arith.constant 0 : index
    %7 = vector.load %arg3[%6, %c0_3, %c0_4] : memref<3x1x128xf32, #tpu.memory_space<vmem>>, vector<1x1x128xf32>
    %8 = vector.shape_cast %7 : vector<1x1x128xf32> to vector<1x128xf32>
    %9 = vector.broadcast %8 : vector<1x128xf32> to vector<8x128xf32>
    %10 = arith.addf %5, %9 : vector<8x128xf32>
    %cst_5 = arith.constant 0.000000e+00 : f32
    %11 = vector.broadcast %cst_5 : f32 to vector<8x128xf32>
    %12 = arith.maximumf %10, %11 : vector<8x128xf32>
    %13 = arith.truncf %12 : vector<8x128xf32> to vector<8x128xbf16>
    %c1_i32 = arith.constant 1 : i32
    %14 = arith.index_cast %c1_i32 : i32 to index
    %c0_6 = arith.constant 0 : index
    %c0_7 = arith.constant 0 : index
    %15 = vector.load %arg2[%14, %c0_6, %c0_7] : memref<3x128x128xbf16, #tpu.memory_space<vmem>>, vector<1x128x128xbf16>
    %16 = vector.shape_cast %15 : vector<1x128x128xbf16> to vector<128x128xbf16>
    %cst_8 = arith.constant dense<0.000000e+00> : vector<8x128xf32>
    %17 = tpu.matmul %13, %16, %cst_8 {dimension_numbers = #tpu.dot_dimension_numbers<[1], [0], [0], [1], [0, 0, 1, 1], [], []>} : vector<8x128xbf16>, vector<128x128xbf16>, vector<8x128xf32> -> vector<8x128xf32>
    %18 = arith.index_cast %c1_i32 : i32 to index
    %c0_9 = arith.constant 0 : index
    %c0_10 = arith.constant 0 : index
    %19 = vector.load %arg3[%18, %c0_9, %c0_10] : memref<3x1x128xf32, #tpu.memory_space<vmem>>, vector<1x1x128xf32>
    %20 = vector.shape_cast %19 : vector<1x1x128xf32> to vector<1x128xf32>
    %21 = vector.broadcast %20 : vector<1x128xf32> to vector<8x128xf32>
    %22 = arith.addf %17, %21 : vector<8x128xf32>
    %cst_11 = arith.constant 0.000000e+00 : f32
    %23 = vector.broadcast %cst_11 : f32 to vector<8x128xf32>
    %24 = arith.maximumf %22, %23 : vector<8x128xf32>
    %25 = arith.truncf %24 : vector<8x128xf32> to vector<8x128xbf16>
    %c2_i32 = arith.constant 2 : i32
    %26 = arith.index_cast %c2_i32 : i32 to index
    %c0_12 = arith.constant 0 : index
    %c0_13 = arith.constant 0 : index
    %27 = vector.load %arg2[%26, %c0_12, %c0_13] : memref<3x128x128xbf16, #tpu.memory_space<vmem>>, vector<1x128x128xbf16>
    %28 = vector.shape_cast %27 : vector<1x128x128xbf16> to vector<128x128xbf16>
    %cst_14 = arith.constant dense<0.000000e+00> : vector<8x128xf32>
    %29 = tpu.matmul %25, %28, %cst_14 {dimension_numbers = #tpu.dot_dimension_numbers<[1], [0], [0], [1], [0, 0, 1, 1], [], []>} : vector<8x128xbf16>, vector<128x128xbf16>, vector<8x128xf32> -> vector<8x128xf32>
    %30 = arith.index_cast %c2_i32 : i32 to index
    %c0_15 = arith.constant 0 : index
    %c0_16 = arith.constant 0 : index
    %31 = vector.load %arg3[%30, %c0_15, %c0_16] : memref<3x1x128xf32, #tpu.memory_space<vmem>>, vector<1x1x128xf32>
    %32 = vector.shape_cast %31 : vector<1x1x128xf32> to vector<1x128xf32>
    %33 = vector.broadcast %32 : vector<1x128xf32> to vector<8x128xf32>
    %34 = arith.addf %29, %33 : vector<8x128xf32>
    %cst_17 = arith.constant 0.000000e+00 : f32
    %35 = vector.broadcast %cst_17 : f32 to vector<8x128xf32>
    %36 = arith.maximumf %34, %35 : vector<8x128xf32>
    %37 = arith.truncf %36 : vector<8x128xf32> to vector<8x128xbf16>
    %c3_i32 = arith.constant 3 : i32
    %38 = arith.extf %37 : vector<8x128xbf16> to vector<8x128xf32>
    %c0_18 = arith.constant 0 : index
    %c0_19 = arith.constant 0 : index
    %39 = vector.load %arg4[%c0_18, %c0_19] : memref<8x128xf32, #tpu.memory_space<vmem>>, vector<8x128xf32>
    tpu.vector_store %arg4[%c0_18, %c0_19], %38 {strides = array<i32>} : memref<8x128xf32, #tpu.memory_space<vmem>>, vector<8x128xf32>,
    return
  }
  func.func @transform_0(%arg0: i32) -> (i32, i32) {
    %c0_i32 = arith.constant 0 : i32
    %c0_i32_0 = arith.constant 0 : i32
    %c0_i32_1 = arith.constant 0 : i32
    return %c0_i32, %c0_i32_0 : i32, i32
  }
  func.func @transform_1(%arg0: i32) -> (i32, i32, i32) {
    %c0_i32 = arith.constant 0 : i32
    %c0_i32_0 = arith.constant 0 : i32
    %c0_i32_1 = arith.constant 0 : i32
    %c0_i32_2 = arith.constant 0 : i32
    return %c0_i32, %c0_i32_0, %c0_i32_1 : i32, i32, i32
  }
  func.func @transform_2(%arg0: i32) -> (i32, i32, i32) {
    %c0_i32 = arith.constant 0 : i32
    %c0_i32_0 = arith.constant 0 : i32
    %c0_i32_1 = arith.constant 0 : i32
    %c0_i32_2 = arith.constant 0 : i32
    return %c0_i32, %c0_i32_0, %c0_i32_1 : i32, i32, i32
  }
  func.func @transform_3(%arg0: i32) -> (i32, i32) {
    %c0_i32 = arith.constant 0 : i32
    %c0_i32_0 = arith.constant 0 : i32
    %c0_i32_1 = arith.constant 0 : i32
    return %c0_i32, %c0_i32_0 : i32, i32
  }
}

</mosaic_0001>

<bundles_post_ra>
// kernel: dummy_model_forward.1
= control target key start
LH: loop header
LB: loop body
LE: loop exit
PB: predicated region body
PF: predicated region fallthrough
CT: control target
= control target key end

     0   :  { %8 = vsyncpa [#allocation3], 0  ;;  %s608_s0 = inlined_call_operand.hbm [shape: f32[8,128], index: 0, kind: input, shape index: {}]   ;;  %s609_s1 = inlined_call_operand.hbm [shape: bf16[3,128,128], index: 1, kind: input, shape index: {}]   ;;  %s610_s2 = inlined_call_operand.hbm [shape: f32[3,1,128], index: 2, kind: input, shape index: {}]   ;;  %s611_s3 = inlined_call_operand.hbm [shape: f32[8,128], index: 3, kind: output, shape index: {}]  }
   0x1   :  { %9 = vsyncpa [#allocation6], 0  ;;  %s26_s14 = sshll.u32 %s609_s1, 4  ;;  %s27_s14 = int_to_ptr.hbm [resolvable:$true] %s26_s14 }
   0x2   :  { %10 = vsyncpa [#allocation4], 0  ;;  %s568_s15 = smov [#allocation5]   ;;  %s16_s19 = sshll.u32 %s608_s0, 4  ;;  %s17_s19 = int_to_ptr.hbm [resolvable:$true] %s16_s19 }
   0x3   :  { %s28_s16 = sshll.u32 %s568_s15, 4  ;;  %s569_s20 = smov 64   ;;  %s29_s16 = int_to_ptr.vmem [resolvable:$true] %s28_s16 }
   0x4   :  { %s570_s21 = smov 4   ;;  %s571_s22 = smov [#allocation2]  }
   0x5   :  { %34 = dma.hbm_to_vmem [thread:$0]  %s27_s14, 3072, %s29_s16, [#allocation6], %s569_s20, %s569_s20, %s570_s21  }
   0x6   :  { %s18_s23 = sshll.u32 %s571_s22, 4  ;;  %s39_s26 = sshll.u32 %s610_s2, 4  ;;  %s19_s23 = int_to_ptr.vmem [resolvable:$true] %s18_s23  ;;  %s40_s26 = int_to_ptr.hbm [resolvable:$true] %s39_s26 }
   0x7   :  { %21 = dma.hbm_to_vmem [thread:$0]  %s17_s19, 128, %s19_s23, [#allocation3]  }
   0x8   :  { %s572_s1 = smov [#allocation7]   ;;  %s573_s28 = smov 16  }
   0x9   :  { %s41_s27 = sshll.u32 %s572_s1, 4  ;;  %s574_s29 = smov 1   ;;  %s42_s27 = int_to_ptr.vmem [resolvable:$true] %s41_s27 }
   0xa   :  { %47 = dma.hbm_to_vmem [thread:$0]  %s40_s26, 48, %s42_s27, [#allocation6], %s573_s28, %s573_s28, %s574_s29  }
   0xb   :  { %562 = dma.done.wait [#allocation3], 128  }
   0xc   :  { %563 = vsyncadd [#allocation3], 4294967168 }
   0xd   :  { %564 = dma.done.wait [#allocation6], 3120  }
   0xe   :  { %565 = vsyncadd [#allocation6], 4294964176  ;;  %v438_v0 = vld [vmem:[#allocation5 + $0x38] sm:$0xff]  ;;  %v437_v1 = vld [vmem:[#allocation5 + $0x30] sm:$0xff]  ;;  %s575_s0 = smov [#allocation8]   ;;  %s324_s5 = sshll.u32 %s611_s3, 4  ;;  %s325_s5 = int_to_ptr.hbm [resolvable:$true] %s324_s5 }
   0xf   :  { %130 = vmatpush.bf16.msra.mxu0 %v438_v0  ;;  %v446_v2 = vld [vmem:[#allocation5 + $0x78] sm:$0xff]  ;;  %v445_v3 = vld [vmem:[#allocation5 + $0x70] sm:$0xff]  ;;  %v436_v4 = vld [vmem:[#allocation5 + $0x28] sm:$0xff]  ;;  %s322_s2 = sshll.u32 %s575_s0, 4  ;;  %s323_s2 = int_to_ptr.vmem [resolvable:$true] %s322_s2 }
  0x10   :  { %215 = vmatpush.bf16.msra.mxu1 %v446_v2  ;;  %v444_v5 = vld [vmem:[#allocation5 + $0x68] sm:$0xff]  ;;  %v435_v6 = vld [vmem:[#allocation5 + $0x20] sm:$0xff]  ;;  %v434_v8 = vld [vmem:[#allocation5 + $0x18] sm:$0xff] }
  0x11   :  { %v443_v7 = vld [vmem:[#allocation5 + $0x60] sm:$0xff]  ;;  %v442_v9 = vld [vmem:[#allocation5 + $0x58] sm:$0xff]  ;;  %v433_v10 = vld [vmem:[#allocation5 + $0x10] sm:$0xff] }
  0x12   :  { %v441_v11 = vld [vmem:[#allocation5 + $0x50] sm:$0xff]  ;;  %v432_v12 = vld [vmem:[#allocation5 + $0x8] sm:$0xff]  ;;  %v431_v13 = vld [vmem:[#allocation5] sm:$0xff] }
  0x13   :  { %131 = vmatpush.bf16.msra.mxu0 %v437_v1  ;;  %v60_v14 = vld [vmem:[#allocation2] sm:$0xff]  ;;  %v440_v16 = vld [vmem:[#allocation5 + $0x48] sm:$0xff]  ;;  %v439_v17 = vld [vmem:[#allocation5 + $0x40] sm:$0xff] }
  0x14   :  { %216 = vmatpush.bf16.msra.mxu1 %v445_v3  ;;  %v61_v15 = vpack.c.bf16 %v60_v14, %v60_v14  ;;  %v454_v18 = vld [vmem:[#allocation5 + $0xb8] sm:$0xff]  ;;  %v453_v19 = vld [vmem:[#allocation5 + $0xb0] sm:$0xff]  ;;  %v452_v20 = vld [vmem:[#allocation5 + $0xa8] sm:$0xff] }
  0x15   :  { %300 = vmatpush.bf16.msra.mxu2 %v454_v18  ;;  %v451_v21 = vld [vmem:[#allocation5 + $0xa0] sm:$0xff]  ;;  %v450_v22 = vld [vmem:[#allocation5 + $0x98] sm:$0xff]  ;;  %v449_v23 = vld [vmem:[#allocation5 + $0x90] sm:$0xff] }
  0x16   :  { %v463_v24 = vld [vmem:[#allocation7] ss:$0 sm:$0xff]  ;;  %v448_v30 = vld [vmem:[#allocation5 + $0x88] sm:$0xff]  ;;  %v464_v32 = vld [vmem:[#allocation7 + $0x1] ss:$0 sm:$0xff] }
  0x17   :  { %132 = vmatpush.bf16.msra.mxu0 %v436_v4  ;;  %v447_v31 = vld [vmem:[#allocation5 + $0x80] sm:$0xff] }
  0x18   :  { %217 = vmatpush.bf16.msra.mxu1 %v444_v5  ;;  %v465_v38 = vld [vmem:[#allocation7 + $0x2] ss:$0 sm:$0xff] }
  0x19   :  { %301 = vmatpush.bf16.msra.mxu2 %v453_v19 }
  0x1b   :  { %133 = vmatpush.bf16.msra.mxu0 %v435_v6 }
  0x1c   :  { %218 = vmatpush.bf16.msra.mxu1 %v443_v7 }
  0x1d   :  { %302 = vmatpush.bf16.msra.mxu2 %v452_v20 }
  0x1f   :  { %134 = vmatpush.bf16.msra.mxu0 %v434_v8 }
  0x20   :  { %219 = vmatpush.bf16.msra.mxu1 %v442_v9 }
  0x21   :  { %303 = vmatpush.bf16.msra.mxu2 %v451_v21 }
  0x23   :  { %135 = vmatpush.bf16.msra.mxu0 %v433_v10 }
  0x24   :  { %220 = vmatpush.bf16.msra.mxu1 %v441_v11 }
  0x25   :  { %304 = vmatpush.bf16.msra.mxu2 %v450_v22 }
  0x27   :  { %136 = vmatpush.bf16.msra.mxu0 %v432_v12 }
  0x28   :  { %221 = vmatpush.bf16.msra.mxu1 %v440_v16 }
  0x29   :  { %305 = vmatpush.bf16.msra.mxu2 %v449_v23 }
  0x2b   :  { %137 = vmatpush.bf16.msra.mxu0 %v431_v13 }
  0x2c   :  { %222 = vmatpush.bf16.msra.mxu1 %v439_v17 }
  0x2d   :  { %306 = vmatpush.bf16.msra.mxu2 %v448_v30 }
  0x2e   :  { %138 = vmatmul.bf16.vlgmr.msra.gmra.mxu0 %v61_v15 }
  0x31   :  { %307 = vmatpush.bf16.msra.mxu2 %v447_v31 }
  0xab   :  { %v139_v25 = vpop.f32.mrf.mxu0 }
  0xac   :  { %v140_v26 = vadd.f32 %v463_v24, %v139_v25 }
  0xae   :  { %v143_v27 = vmax.f32 %v140_v26, 0.0 }
  0xb0   :  { %v144_v28 = vpack.c.bf16 %v143_v27, %v143_v27 }
  0xb2   :  { %223 = vmatmul.bf16.vlgmr.msra.gmra.mxu1 %v144_v28 }
  0xb3   :  { %v141_v29 = vpop.f32.mrf.mxu0 }
 0x12f   :  { %v224_v33 = vpop.f32.mrf.mxu1 }
 0x130   :  { %v225_v34 = vadd.f32 %v464_v32, %v224_v33 }
 0x132   :  { %v228_v35 = vmax.f32 %v225_v34, 0.0 }
 0x134   :  { %v229_v36 = vpack.c.bf16 %v228_v35, %v228_v35 }
 0x136   :  { %308 = vmatmul.bf16.vlgmr.msra.gmra.mxu2 %v229_v36 }
 0x137   :  { %v226_v37 = vpop.f32.mrf.mxu1 }
 0x1b9   :  { %v309_v39 = vpop.f32.mrf.mxu2 }
 0x1ba   :  { %v310_v40 = vadd.f32 %v465_v38, %v309_v39 }
 0x1bc   :  { %v313_v41 = vmax.f32 %v310_v40, 0.0 }
 0x1be   :  { %v314_v42 = vpack.c.bf16 %v313_v41, %v313_v41 }
 0x1c0   :  { %v315_v43 = vunpack.c.l.bf16 %v314_v42 }
 0x1c1   :  { %v311_v44 = vpop.f32.mrf.mxu2 }
 0x1c2   :  { %316 = vst [vmem:[#allocation8] sm:$0xff] %v315_v43 }
 0x1c3   :  { %327 = dma.vmem_to_hbm [thread:$0]  %s323_s2, 128, %s325_s5, [#allocation4]  }
 0x1c4   :  { %566 = dma.done.wait [#allocation4], 128  }
 0x1c5   :  { %567 = vsyncadd [#allocation4], 4294967168 }
 0x1c6   :  { %332 = vsyncpa [#allocation3], 1 }
 0x1c7   :  { %333 = vsyncpa [#allocation6], 1 }
 0x1c8   :  { %334 = vsyncpa [#allocation4], 1 }

</bundles_post_ra>
